<compile_context>
chip_gen: v5e
topology: v5e:2x2
jax: 0.10.0
libtpu: 0.0.40
codegen_flags: <defaults>
</compile_context>

<pallas_src>
import functools

import jax
import jax.numpy as jnp
from jax import lax
from jax.experimental import pallas as pl
from jax.experimental.pallas import tpu as pltpu
import numpy as np


def _round_up(x, m):
    return (x + m - 1) // m * m


def _conv_taps(x_ref, w_ref, *, K, S, Cin, Wq, cols):
    """Accumulate the K*K conv taps into an f32 (Cout, cols) value.

    x_ref block: (1, S*S*Cin, L_in)  rows = (stride-phase, in-channel),
                                     lanes = flattened padded spatial grid.
    w_ref block: (K*K, Cout, Cin)    per-tap weight matrices.
    All slice offsets below are static Python ints (fully unrolled tap loop).
    """
    acc = None
    for dy in range(K):
        qy, py = divmod(dy, S)
        for dx in range(K):
            qx, px = divmod(dx, S)
            row0 = (py * S + px) * Cin            # stride-phase row band
            off = qy * Wq + qx                    # static lane offset of this tap
            tap = x_ref[0, pl.ds(row0, Cin), pl.ds(off, cols)]        # (Cin, cols)
            part = jnp.dot(w_ref[dy * K + dx], tap,
                           preferred_element_type=jnp.float32)        # (Cout, cols)
            acc = part if acc is None else acc + part
    return acc


def _conv_bn_relu_kernel(x_ref, w_ref, shift_ref, o_ref, *, K, S, Cin, Wq):
    cols = o_ref.shape[2]
    acc = _conv_taps(x_ref, w_ref, K=K, S=S, Cin=Cin, Wq=Wq, cols=cols)
    # BN (eval) scale is already folded into w_ref; epilogue = shift + ReLU.
    o_ref[0] = jnp.maximum(acc + shift_ref[...], 0.0).astype(o_ref.dtype)


def _conv_in_relu_kernel(x_ref, w_ref, gamma_ref, beta_ref, m_ref, bT_ref, o_ref,
                         *, K, S, Cin, Wq, eps):
    cols = o_ref.shape[2]
    acc = _conv_taps(x_ref, w_ref, K=K, S=S, Cin=Cin, Wq=Wq, cols=cols)
    # Masked segment matmuls: exact per-(sample, channel) spatial stats even
    # when several samples are packed into one lane-dense block, and the
    # padded-grid garbage columns are excluded.
    m = m_ref[...]               # (cols, G): 1/(Ho*Wo) at valid cols of sample g
    bT = bT_ref[...]             # (G, cols): segment membership (incl. garbage)
    mean = jnp.dot(acc, m, preferred_element_type=jnp.float32)        # (Cout, G)
    mean_c = jnp.dot(mean, bT, preferred_element_type=jnp.float32)    # (Cout, cols)
    cen = acc - mean_c
    var = jnp.dot(cen * cen, m, preferred_element_type=jnp.float32)   # (Cout, G)
    inv = lax.rsqrt(jnp.maximum(var, 0.0) + eps)
    inv_c = jnp.dot(inv, bT, preferred_element_type=jnp.float32)      # (Cout, cols)
    y = cen * inv_c * gamma_ref[...] + beta_ref[...]
    o_ref[0] = jnp.maximum(y, 0.0).astype(o_ref.dtype)


def conv_layer_pallas(x, weight, norm_params, *, stride=1, padding=0, groups=1,
                      use_in=False, compute_dtype=jnp.float32, target_lanes=256):
    """OSNet ConvLayer forward: Conv2d(bias=False) -> BN(eval)/IN(affine) -> ReLU.

    x:      (N, Cin, H, W) float32 (PyTorch NCHW layout)
    weight: (Cout, Cin // groups, K, K) (PyTorch OIHW layout)
    norm_params: BN: (gamma, beta, running_mean, running_var, eps)
                 IN: (gamma, beta, eps)
    compute_dtype: jnp.float32 (exact) or jnp.bfloat16 (v6e/v7x fast path,
                   f32 accumulation kept in-kernel).
    """
    N, Cin, H, W = x.shape
    Cout = weight.shape[0]
    K = weight.shape[2]
    S, P = stride, padding
    Ho = (H + 2 * P - K) // S + 1
    Wo = (W + 2 * P - K) // S + 1
    Hp, Wp = H + 2 * P, W + 2 * P
    Hq, Wq = -(-Hp // S), -(-Wp // S)            # stride-phase grid size
    per = Hq * Wq                                # padded-grid columns per sample

    # ---- sample grouping: pack samples until the lane dim is >= target -----
    want = max(1, -(-target_lanes // per))
    G = 1
    for d in range(1, N + 1):
        if N % d == 0 and d <= want:
            G = d
    Ng = N // G
    cols = G * per
    L_out = _round_up(cols, 128)                           # lane-dense output tile
    o_max = ((K - 1) // S) * Wq + (K - 1) // S             # largest tap lane offset
    L_in = _round_up(L_out + o_max, 128)

    # ---- layout plumbing (~1x input bytes; no K*K expansion in HBM) --------
    xp = jnp.pad(x, ((0, 0), (0, 0),
                     (P, P + Hq * S - Hp), (P, P + Wq * S - Wp)))
    xq = xp.reshape(N, Cin, Hq, S, Wq, S).transpose(0, 3, 5, 1, 2, 4)
    xq = xq.reshape(N, S * S * Cin, per)
    rhs = (xq.reshape(Ng, G, S * S * Cin, per)
             .transpose(0, 2, 1, 3)
             .reshape(Ng, S * S * Cin, cols))
    rhs = jnp.pad(rhs, ((0, 0), (0, 0), (0, L_in - cols))).astype(compute_dtype)

    # ---- weights: grouped conv via an exact block-diagonal weight ----------
    # TODO(synk): for high-group / depthwise layers use a group grid axis
    # instead of zero-padding (zero padding is exact but wastes groups-x MXU).
    if groups == 1:
        w_full = weight
    else:
        ci_g, co_g = Cin // groups, Cout // groups
        w_full = jnp.zeros((Cout, Cin, K, K), weight.dtype)
        for g in range(groups):
            w_full = w_full.at[g * co_g:(g + 1) * co_g,
                               g * ci_g:(g + 1) * ci_g].set(
                weight[g * co_g:(g + 1) * co_g])
    w_full = w_full.astype(jnp.float32)

    if use_in:
        gamma, beta, eps = norm_params
        a = gamma.reshape(Cout, 1).astype(jnp.float32)
        b = beta.reshape(Cout, 1).astype(jnp.float32)
        w_eff = w_full
    else:
        gamma, beta, mean, var, eps = norm_params
        scale = (gamma / jnp.sqrt(var + eps)).astype(jnp.float32)
        b = (beta - mean * scale).reshape(Cout, 1).astype(jnp.float32)
        w_eff = w_full * scale[:, None, None, None]       # fold BN scale into conv
    w_taps = (jnp.transpose(w_eff, (2, 3, 0, 1))
                 .reshape(K * K, Cout, Cin)
                 .astype(compute_dtype))

    x_spec = pl.BlockSpec((1, S * S * Cin, L_in), lambda g: (g, 0, 0))
    w_spec = pl.BlockSpec((K * K, Cout, Cin), lambda g: (0, 0, 0))
    v_spec = pl.BlockSpec((Cout, 1), lambda g: (0, 0))
    out_spec = pl.BlockSpec((1, Cout, L_out), lambda g: (g, 0, 0))
    out_shape = jax.ShapeDtypeStruct((Ng, Cout, L_out), jnp.float32)
    cparams = pltpu.CompilerParams(dimension_semantics=("parallel",))

    if use_in:
        # Host-built static segment matrices (valid columns / segment membership).
        col = np.arange(L_out)
        sid = col // per
        r = col % per
        in_seg = col < cols
        valid = in_seg & (r // Wq < Ho) & (r % Wq < Wo)
        onehot = (sid[:, None] == np.arange(G)[None, :]) & in_seg[:, None]
        m_mat = jnp.asarray(
            np.where(valid[:, None] & onehot, 1.0 / (Ho * Wo), 0.0), jnp.float32)
        bT_mat = jnp.asarray(onehot.T.astype(np.float32))
        kern = functools.partial(_conv_in_relu_kernel,
                                 K=K, S=S, Cin=Cin, Wq=Wq, eps=float(eps))
        out = pl.pallas_call(
            kern, out_shape=out_shape,
            grid_spec=pltpu.PrefetchScalarGridSpec(
                num_scalar_prefetch=0, grid=(Ng,),
                in_specs=[x_spec, w_spec, v_spec, v_spec,
                          pl.BlockSpec((L_out, G), lambda g: (0, 0)),
                          pl.BlockSpec((G, L_out), lambda g: (0, 0))],
                out_specs=out_spec),
            compiler_params=cparams,
        )(rhs, w_taps, a, b, m_mat, bT_mat)
    else:
        kern = functools.partial(_conv_bn_relu_kernel, K=K, S=S, Cin=Cin, Wq=Wq)
        out = pl.pallas_call(
            kern, out_shape=out_shape,
            grid_spec=pltpu.PrefetchScalarGridSpec(
                num_scalar_prefetch=0, grid=(Ng,),
                in_specs=[x_spec, w_spec, v_spec],
                out_specs=out_spec),
            compiler_params=cparams,
        )(rhs, w_taps, b)

    # Undo the padded-grid / sample-group layout (wrapper-side plumbing).
    out = out[:, :, :cols].reshape(Ng, Cout, G, Hq, Wq)[:, :, :, :Ho, :Wo]
    return out.transpose(0, 2, 1, 3, 4).reshape(N, Cout, Ho, Wo)


def conv_layer_ref(x, weight, norm_params, *, stride=1, padding=0,
                   groups=1, use_in=False):
    """Pure-JAX (XLA conv) reference of the PyTorch forward."""
    y = lax.conv_general_dilated(
        x, weight, window_strides=(stride, stride),
        padding=((padding, padding), (padding, padding)),
        dimension_numbers=("NCHW", "OIHW", "NCHW"),
        feature_group_count=groups)
    if use_in:
        gamma, beta, eps = norm_params
        mean = jnp.mean(y, axis=(2, 3), keepdims=True)
        var = jnp.mean(jnp.square(y - mean), axis=(2, 3), keepdims=True)
        y = (y - mean) / jnp.sqrt(var + eps)
        y = y * gamma[None, :, None, None] + beta[None, :, None, None]
    else:
        gamma, beta, mean, var, eps = norm_params
        scale = gamma / jnp.sqrt(var + eps)
        shift = beta - mean * scale
        y = y * scale[None, :, None, None] + shift[None, :, None, None]
    return jnp.maximum(y, 0.0)


def _make_case(key, N, Cin, Cout, H, W, K, groups):
    ks = jax.random.split(key, 6)
    x = jax.random.normal(ks[0], (N, Cin, H, W), jnp.float32)
    w = jax.random.normal(ks[1], (Cout, Cin // groups, K, K), jnp.float32) * 0.2
    gamma = 1.0 + 0.1 * jax.random.normal(ks[2], (Cout,), jnp.float32)
    beta = 0.1 * jax.random.normal(ks[3], (Cout,), jnp.float32)
    mean = 0.1 * jax.random.normal(ks[4], (Cout,), jnp.float32)
    var = jnp.abs(jax.random.normal(ks[5], (Cout,), jnp.float32)) + 0.5
    return x, w, gamma, beta, mean, var


if __name__ == "__main__":
    key = jax.random.PRNGKey(0)
    eps = 1e-5

    # Case 1: ConvLayer(4, 8, 3, stride=1, padding=1), BatchNorm + ReLU.
    key, k1 = jax.random.split(key)
    x, w, gamma, beta, mean, var = _make_case(k1, 2, 4, 8, 16, 16, 3, 1)
    bn = (gamma, beta, mean, var, eps)
    out = jax.block_until_ready(conv_layer_pallas(
        x, w, bn, stride=1, padding=1, groups=1, use_in=False))
    ref = jax.block_until_ready(conv_layer_ref(
        x, w, bn, stride=1, padding=1, groups=1, use_in=False))
    np.testing.assert_allclose(np.asarray(out), np.asarray(ref),
                               rtol=2e-4, atol=2e-4)
    assert out.shape == (2, 8, 16, 16)

    # Case 1b: same layer with bf16 matmul operands (v6e/v7x fast path).
    out_bf16 = jax.block_until_ready(conv_layer_pallas(
        x, w, bn, stride=1, padding=1, groups=1, use_in=False,
        compute_dtype=jnp.bfloat16))
    np.testing.assert_allclose(np.asarray(out_bf16), np.asarray(ref),
                               rtol=1e-1, atol=1e-1)

    # Case 2: OSNet-stem style ConvLayer(4, 8, 7, stride=2, padding=3, IN=True).
    key, k2 = jax.random.split(key)
    x, w, gamma, beta, _, _ = _make_case(k2, 2, 4, 8, 16, 16, 7, 1)
    inorm = (gamma, beta, eps)
    out = jax.block_until_ready(conv_layer_pallas(
        x, w, inorm, stride=2, padding=3, groups=1, use_in=True))
    ref = jax.block_until_ready(conv_layer_ref(
        x, w, inorm, stride=2, padding=3, groups=1, use_in=True))
    np.testing.assert_allclose(np.asarray(out), np.asarray(ref),
                               rtol=2e-4, atol=2e-4)
    assert out.shape == (2, 8, 8, 8)

    # Case 3: grouped conv, ConvLayer(4, 8, 3, padding=1, groups=2), BN + ReLU.
    key, k3 = jax.random.split(key)
    x, w, gamma, beta, mean, var = _make_case(k3, 2, 4, 8, 16, 16, 3, 2)
    bn = (gamma, beta, mean, var, eps)
    out = jax.block_until_ready(conv_layer_pallas(
        x, w, bn, stride=1, padding=1, groups=2, use_in=False))
    ref = jax.block_until_ready(conv_layer_ref(
        x, w, bn, stride=1, padding=1, groups=2, use_in=False))
    np.testing.assert_allclose(np.asarray(out), np.asarray(ref),
                               rtol=2e-4, atol=2e-4)

    print("KERNEL_OK")
</pallas_src>

<mosaic_0001>
module attributes {stable_mosaic.version = 11 : i64} {
  func.func @_conv_bn_relu_kernel(%arg0: i32, %arg1: memref<1x4x512xf32, #tpu.memory_space<vmem>>, %arg2: memref<9x8x4xf32, #tpu.memory_space<vmem>>, %arg3: memref<8x1xf32, #tpu.memory_space<vmem>>, %arg4: memref<1x8x384xf32, #tpu.memory_space<vmem>>) attributes {dimension_semantics = [#tpu.dimension_semantics<parallel>], iteration_bounds = array<i64: 2>, scalar_prefetch = 0 : i64, scratch_operands = 0 : i64, tpu.core_type = #tpu.core_type<tc>, window_params = [{transform_indices = @transform_0, window_bounds = array<i64: 1, 4, 512>}, {pipeline_mode = #tpu.pipeline_mode<synchronous>, transform_indices = @transform_1, window_bounds = array<i64: 9, 8, 4>}, {pipeline_mode = #tpu.pipeline_mode<synchronous>, transform_indices = @transform_2, window_bounds = array<i64: 8, 1>}, {transform_indices = @transform_3, window_bounds = array<i64: 1, 8, 384>}]} {
    %c0 = arith.constant 0 : index
    %c0_0 = arith.constant 0 : index
    %c0_1 = arith.constant 0 : index
    %0 = vector.load %arg1[%c0, %c0_0, %c0_1] : memref<1x4x512xf32, #tpu.memory_space<vmem>>, vector<1x4x384xf32>
    %1 = vector.shape_cast %0 : vector<1x4x384xf32> to vector<4x384xf32>
    %c0_2 = arith.constant 0 : index
    %c0_3 = arith.constant 0 : index
    %c0_4 = arith.constant 0 : index
    %2 = vector.load %arg2[%c0_2, %c0_3, %c0_4] : memref<9x8x4xf32, #tpu.memory_space<vmem>>, vector<1x8x4xf32>
    %3 = vector.shape_cast %2 : vector<1x8x4xf32> to vector<8x4xf32>
    %cst = arith.constant dense<0.000000e+00> : vector<8x384xf32>
    %4 = tpu.matmul %3, %1, %cst {dimension_numbers = #tpu.dot_dimension_numbers<[1], [0], [0], [1], [0, 0, 1, 1], [], []>} : vector<8x4xf32>, vector<4x384xf32>, vector<8x384xf32> -> vector<8x384xf32>
    %c0_5 = arith.constant 0 : index
    %c0_6 = arith.constant 0 : index
    %c1 = arith.constant 1 : index
    %5 = vector.load %arg1[%c0_5, %c0_6, %c1] : memref<1x4x512xf32, #tpu.memory_space<vmem>>, vector<1x4x384xf32>
    %6 = vector.shape_cast %5 : vector<1x4x384xf32> to vector<4x384xf32>
    %c1_7 = arith.constant 1 : index
    %c0_8 = arith.constant 0 : index
    %c0_9 = arith.constant 0 : index
    %7 = vector.load %arg2[%c1_7, %c0_8, %c0_9] : memref<9x8x4xf32, #tpu.memory_space<vmem>>, vector<1x8x4xf32>
    %8 = vector.shape_cast %7 : vector<1x8x4xf32> to vector<8x4xf32>
    %cst_10 = arith.constant dense<0.000000e+00> : vector<8x384xf32>
    %9 = tpu.matmul %8, %6, %cst_10 {dimension_numbers = #tpu.dot_dimension_numbers<[1], [0], [0], [1], [0, 0, 1, 1], [], []>} : vector<8x4xf32>, vector<4x384xf32>, vector<8x384xf32> -> vector<8x384xf32>
    %10 = arith.addf %4, %9 : vector<8x384xf32>
    %c0_11 = arith.constant 0 : index
    %c0_12 = arith.constant 0 : index
    %c2 = arith.constant 2 : index
    %11 = vector.load %arg1[%c0_11, %c0_12, %c2] : memref<1x4x512xf32, #tpu.memory_space<vmem>>, vector<1x4x384xf32>
    %12 = vector.shape_cast %11 : vector<1x4x384xf32> to vector<4x384xf32>
    %c2_13 = arith.constant 2 : index
    %c0_14 = arith.constant 0 : index
    %c0_15 = arith.constant 0 : index
    %13 = vector.load %arg2[%c2_13, %c0_14, %c0_15] : memref<9x8x4xf32, #tpu.memory_space<vmem>>, vector<1x8x4xf32>
    %14 = vector.shape_cast %13 : vector<1x8x4xf32> to vector<8x4xf32>
    %cst_16 = arith.constant dense<0.000000e+00> : vector<8x384xf32>
    %15 = tpu.matmul %14, %12, %cst_16 {dimension_numbers = #tpu.dot_dimension_numbers<[1], [0], [0], [1], [0, 0, 1, 1], [], []>} : vector<8x4xf32>, vector<4x384xf32>, vector<8x384xf32> -> vector<8x384xf32>
    %16 = arith.addf %10, %15 : vector<8x384xf32>
    %c0_17 = arith.constant 0 : index
    %c0_18 = arith.constant 0 : index
    %c18 = arith.constant 18 : index
    %17 = vector.load %arg1[%c0_17, %c0_18, %c18] : memref<1x4x512xf32, #tpu.memory_space<vmem>>, vector<1x4x384xf32>
    %18 = vector.shape_cast %17 : vector<1x4x384xf32> to vector<4x384xf32>
    %c3 = arith.constant 3 : index
    %c0_19 = arith.constant 0 : index
    %c0_20 = arith.constant 0 : index
    %19 = vector.load %arg2[%c3, %c0_19, %c0_20] : memref<9x8x4xf32, #tpu.memory_space<vmem>>, vector<1x8x4xf32>
    %20 = vector.shape_cast %19 : vector<1x8x4xf32> to vector<8x4xf32>
    %cst_21 = arith.constant dense<0.000000e+00> : vector<8x384xf32>
    %21 = tpu.matmul %20, %18, %cst_21 {dimension_numbers = #tpu.dot_dimension_numbers<[1], [0], [0], [1], [0, 0, 1, 1], [], []>} : vector<8x4xf32>, vector<4x384xf32>, vector<8x384xf32> -> vector<8x384xf32>
    %22 = arith.addf %16, %21 : vector<8x384xf32>
    %c0_22 = arith.constant 0 : index
    %c0_23 = arith.constant 0 : index
    %c19 = arith.constant 19 : index
    %23 = vector.load %arg1[%c0_22, %c0_23, %c19] : memref<1x4x512xf32, #tpu.memory_space<vmem>>, vector<1x4x384xf32>
    %24 = vector.shape_cast %23 : vector<1x4x384xf32> to vector<4x384xf32>
    %c4 = arith.constant 4 : index
    %c0_24 = arith.constant 0 : index
    %c0_25 = arith.constant 0 : index
    %25 = vector.load %arg2[%c4, %c0_24, %c0_25] : memref<9x8x4xf32, #tpu.memory_space<vmem>>, vector<1x8x4xf32>
    %26 = vector.shape_cast %25 : vector<1x8x4xf32> to vector<8x4xf32>
    %cst_26 = arith.constant dense<0.000000e+00> : vector<8x384xf32>
    %27 = tpu.matmul %26, %24, %cst_26 {dimension_numbers = #tpu.dot_dimension_numbers<[1], [0], [0], [1], [0, 0, 1, 1], [], []>} : vector<8x4xf32>, vector<4x384xf32>, vector<8x384xf32> -> vector<8x384xf32>
    %28 = arith.addf %22, %27 : vector<8x384xf32>
    %c0_27 = arith.constant 0 : index
    %c0_28 = arith.constant 0 : index
    %c20 = arith.constant 20 : index
    %29 = vector.load %arg1[%c0_27, %c0_28, %c20] : memref<1x4x512xf32, #tpu.memory_space<vmem>>, vector<1x4x384xf32>
    %30 = vector.shape_cast %29 : vector<1x4x384xf32> to vector<4x384xf32>
    %c5 = arith.constant 5 : index
    %c0_29 = arith.constant 0 : index
    %c0_30 = arith.constant 0 : index
    %31 = vector.load %arg2[%c5, %c0_29, %c0_30] : memref<9x8x4xf32, #tpu.memory_space<vmem>>, vector<1x8x4xf32>
    %32 = vector.shape_cast %31 : vector<1x8x4xf32> to vector<8x4xf32>
    %cst_31 = arith.constant dense<0.000000e+00> : vector<8x384xf32>
    %33 = tpu.matmul %32, %30, %cst_31 {dimension_numbers = #tpu.dot_dimension_numbers<[1], [0], [0], [1], [0, 0, 1, 1], [], []>} : vector<8x4xf32>, vector<4x384xf32>, vector<8x384xf32> -> vector<8x384xf32>
    %34 = arith.addf %28, %33 : vector<8x384xf32>
    %c0_32 = arith.constant 0 : index
    %c0_33 = arith.constant 0 : index
    %c36 = arith.constant 36 : index
    %35 = vector.load %arg1[%c0_32, %c0_33, %c36] : memref<1x4x512xf32, #tpu.memory_space<vmem>>, vector<1x4x384xf32>
    %36 = vector.shape_cast %35 : vector<1x4x384xf32> to vector<4x384xf32>
    %c6 = arith.constant 6 : index
    %c0_34 = arith.constant 0 : index
    %c0_35 = arith.constant 0 : index
    %37 = vector.load %arg2[%c6, %c0_34, %c0_35] : memref<9x8x4xf32, #tpu.memory_space<vmem>>, vector<1x8x4xf32>
    %38 = vector.shape_cast %37 : vector<1x8x4xf32> to vector<8x4xf32>
    %cst_36 = arith.constant dense<0.000000e+00> : vector<8x384xf32>
    %39 = tpu.matmul %38, %36, %cst_36 {dimension_numbers = #tpu.dot_dimension_numbers<[1], [0], [0], [1], [0, 0, 1, 1], [], []>} : vector<8x4xf32>, vector<4x384xf32>, vector<8x384xf32> -> vector<8x384xf32>
    %40 = arith.addf %34, %39 : vector<8x384xf32>
    %c0_37 = arith.constant 0 : index
    %c0_38 = arith.constant 0 : index
    %c37 = arith.constant 37 : index
    %41 = vector.load %arg1[%c0_37, %c0_38, %c37] : memref<1x4x512xf32, #tpu.memory_space<vmem>>, vector<1x4x384xf32>
    %42 = vector.shape_cast %41 : vector<1x4x384xf32> to vector<4x384xf32>
    %c7 = arith.constant 7 : index
    %c0_39 = arith.constant 0 : index
    %c0_40 = arith.constant 0 : index
    %43 = vector.load %arg2[%c7, %c0_39, %c0_40] : memref<9x8x4xf32, #tpu.memory_space<vmem>>, vector<1x8x4xf32>
    %44 = vector.shape_cast %43 : vector<1x8x4xf32> to vector<8x4xf32>
    %cst_41 = arith.constant dense<0.000000e+00> : vector<8x384xf32>
    %45 = tpu.matmul %44, %42, %cst_41 {dimension_numbers = #tpu.dot_dimension_numbers<[1], [0], [0], [1], [0, 0, 1, 1], [], []>} : vector<8x4xf32>, vector<4x384xf32>, vector<8x384xf32> -> vector<8x384xf32>
    %46 = arith.addf %40, %45 : vector<8x384xf32>
    %c0_42 = arith.constant 0 : index
    %c0_43 = arith.constant 0 : index
    %c38 = arith.constant 38 : index
    %47 = vector.load %arg1[%c0_42, %c0_43, %c38] : memref<1x4x512xf32, #tpu.memory_space<vmem>>, vector<1x4x384xf32>
    %48 = vector.shape_cast %47 : vector<1x4x384xf32> to vector<4x384xf32>
    %c8 = arith.constant 8 : index
    %c0_44 = arith.constant 0 : index
    %c0_45 = arith.constant 0 : index
    %49 = vector.load %arg2[%c8, %c0_44, %c0_45] : memref<9x8x4xf32, #tpu.memory_space<vmem>>, vector<1x8x4xf32>
    %50 = vector.shape_cast %49 : vector<1x8x4xf32> to vector<8x4xf32>
    %cst_46 = arith.constant dense<0.000000e+00> : vector<8x384xf32>
    %51 = tpu.matmul %50, %48, %cst_46 {dimension_numbers = #tpu.dot_dimension_numbers<[1], [0], [0], [1], [0, 0, 1, 1], [], []>} : vector<8x4xf32>, vector<4x384xf32>, vector<8x384xf32> -> vector<8x384xf32>
    %52 = arith.addf %46, %51 : vector<8x384xf32>
    %c0_47 = arith.constant 0 : index
    %c0_48 = arith.constant 0 : index
    %53 = vector.load %arg3[%c0_47, %c0_48] : memref<8x1xf32, #tpu.memory_space<vmem>>, vector<8x1xf32>
    %54 = vector.broadcast %53 : vector<8x1xf32> to vector<8x384xf32>
    %55 = arith.addf %52, %54 : vector<8x384xf32>
    %cst_49 = arith.constant 0.000000e+00 : f32
    %56 = vector.broadcast %cst_49 : f32 to vector<8x384xf32>
    %57 = arith.maximumf %55, %56 : vector<8x384xf32>
    %c0_50 = arith.constant 0 : index
    %c0_51 = arith.constant 0 : index
    %c0_52 = arith.constant 0 : index
    %58 = vector.load %arg4[%c0_50, %c0_51, %c0_52] : memref<1x8x384xf32, #tpu.memory_space<vmem>>, vector<1x8x384xf32>
    %59 = vector.shape_cast %58 : vector<1x8x384xf32> to vector<8x384xf32>
    %60 = vector.shape_cast %57 : vector<8x384xf32> to vector<1x8x384xf32>
    tpu.vector_store %arg4[%c0_50, %c0_51, %c0_52], %60 {strides = array<i32>} : memref<1x8x384xf32, #tpu.memory_space<vmem>>, vector<1x8x384xf32>,
    return
  }
  func.func @transform_0(%arg0: i32) -> (i32, i32, i32) {
    %c0_i32 = arith.constant 0 : i32
    %c0_i32_0 = arith.constant 0 : i32
    %c0_i32_1 = arith.constant 0 : i32
    return %arg0, %c0_i32, %c0_i32_0 : i32, i32, i32
  }
  func.func @transform_1(%arg0: i32) -> (i32, i32, i32) {
    %c0_i32 = arith.constant 0 : i32
    %c0_i32_0 = arith.constant 0 : i32
    %c0_i32_1 = arith.constant 0 : i32
    %c0_i32_2 = arith.constant 0 : i32
    return %c0_i32, %c0_i32_0, %c0_i32_1 : i32, i32, i32
  }
  func.func @transform_2(%arg0: i32) -> (i32, i32) {
    %c0_i32 = arith.constant 0 : i32
    %c0_i32_0 = arith.constant 0 : i32
    %c0_i32_1 = arith.constant 0 : i32
    return %c0_i32, %c0_i32_0 : i32, i32
  }
  func.func @transform_3(%arg0: i32) -> (i32, i32, i32) {
    %c0_i32 = arith.constant 0 : i32
    %c0_i32_0 = arith.constant 0 : i32
    %c0_i32_1 = arith.constant 0 : i32
    return %arg0, %c0_i32, %c0_i32_0 : i32, i32, i32
  }
}

</mosaic_0001>

<bundles_post_ra>
// kernel: tpu_custom_call.1
= control target key start
LH: loop header
LB: loop body
LE: loop exit
PB: predicated region body
PF: predicated region fallthrough
CT: control target
= control target key end

     0   :  { %8 = vsyncpa [#allocation3], 0  ;;  %s1550_s0 = inlined_call_operand.vmem [shape: f32[2,4,512], index: 0, kind: input, shape index: {}]   ;;  %s1551_s1 = inlined_call_operand.vmem [shape: f32[9,8,4], index: 1, kind: input, shape index: {}]   ;;  %s1552_s2 = inlined_call_operand.vmem [shape: f32[8,1], index: 2, kind: input, shape index: {}]   ;;  %s1553_s3 = inlined_call_operand.hbm [shape: f32[2,8,384], index: 3, kind: output, shape index: {}]  }
   0x1   :  { %10 = vsyncpa [#allocation3 + $0x1], 0  ;;  %s1332_s12 = smov 0   ;;  %s1334_s13 = smov 0  }
   0x2   :  { %s1336_s14 = smov 0   ;;  %s1338_s15 = smov 0  }
   0x3 LB: > { %s1353_s16 = sadd.s32 4294967295, %s1301_s15   ;;  %s1115_s17 = sadd.s32 4294967294, %s1301_s15   ;;  %s1301_s15 = sphi %s1338_s15, %s1559_s15   ;;  %s1297_s14 = sphi %s1336_s14, %s1558_s14   ;;  %s1293_s13 = sphi %s1334_s13, %s1557_s13   ;;  %s1289_s12 = sphi %s1332_s12, %s1556_s12  }
   0x4   : > { %s1357_s18 = sadd.s32 1, %s1301_s15   ;;  %s91_s19 = sadd.s32 1, %s1297_s14 }
   0x5   : > { %s88_s20 = ssub.s32 %s1301_s15, %s1357_s18  ;;  %p101_p0 = scmp.ne.s32.totalorder %s1297_s14, %s1293_s13 }
   0x6   : > { %p89_p1 = scmp.eq.s32.totalorder %s88_s20, 0  ;;  %p102_p2 = scmp.eq.s32.totalorder %s1353_s16, 1 }
   0x7   : > { %p107_p3 = scmp.ne.s32.totalorder %s1293_s13, %s1289_s12  ;;  %p108_p4 = scmp.eq.s32.totalorder %s1115_s17, 1 }
   0x8   : > { %s1368_s21 = scalar_select %p89_p1, %s1297_s14, %s91_s19  }
   0x9   : > { %p1370_p5 = por %p102_p2, %p101_p0  ;;  %p1374_p6 = por %p108_p4, %p107_p3 }
   0xa   : > { %p1118_p7 = scmp.ge.s32.totalorder %s1301_s15, 1  ;;  %p140_p8 = scmp.lt.s32.totalorder %s1301_s15, 3 }
   0xc   : > { %p141_p9 = pnand %p1118_p7, %p140_p8 }
   0xd   : > { %p164_p10 = scmp.lt.s32.totalorder (!%p141_p9), %s1353_s16, 1  ;;  %s1303_s29 = smov (!%p141_p9), 127  }
   0xe   : > { %144 = sbr.rel (%p141_p9) target bundleno = 375 (0x177), region = 32  ;;  %s1304_s30 = smov (!%p141_p9), 126  }
   0xf   : > { %s1305_s4 = smov (!%p141_p9), 110   ;;  %s1306_s5 = smov (!%p141_p9), 109  }
  0x10   : > { %s1307_s6 = smov (!%p141_p9), 108   ;;  %s1308_s7 = smov (!%p141_p9), 92  }
  0x11   : > { %s1309_s8 = smov (!%p141_p9), 91   ;;  %s1310_s9 = smov (!%p141_p9), 90  }
  0x12   : > { %s161_s17 = sand.u32 (!%p141_p9), 1, %s1293_s13   ;;  %s1188_s20 = smul.u32 (!%p141_p9), 24, %s1353_s16 }
  0x13   : > { %s165_s24 = scalar_select %p164_p10, %s1353_s16, 1  ;;  %vm201_vm0 = vcmask 1043456   ;;  %vm197_vm1 = vcmask 31744   ;;  %v171_v39 = vld [vmem:[%s1551_s1] sm:$0xff]  ;;  %vm193_vm2 = vcmask 1039360   ;;  %vm366_vm3 = vcmask 1031168  }
  0x14   : > { %v1121_v50 = vld [vmem:[%s1551_s1 + $0x8] sm:$0xff]  ;;  %vm463_vm4 = vcmask 900096   ;;  %v1134_v54 = vld [vmem:[%s1551_s1 + $0x10] sm:$0xff]  ;;  %v1141_v60 = vld [vmem:[%s1551_s1 + $0x18] sm:$0xff]  ;;  %vm560_vm5 = vcmask 891904   ;;  %vm657_vm6 = vcmask 883712   ;;  %s1051_s26 = scalar_lea.hbm %s1553_s3, %s1188_s20 }
  0x15   : > { %s1186_s25 = sshll.u32 %s165_s24, 4  ;;  %vm754_vm7 = vcmask 752640   ;;  %vm851_vm8 = vcmask 744448   ;;  %vm948_vm9 = vcmask 736256   ;;  %s1187_s19 = smul.u32 24, %s161_s17 }
  0x16   : > { %s168_s28 = scalar_lea.vmem %s1550_s0, %s1186_s25 }
  0x17   : > { %v1385_v0 = vld [vmem:[%s168_s28 + $0x8] sm:$0xff]  ;;  %v1387_v1 = vld [vmem:[%s168_s28] sm:$0xff]  ;;  %s163_s16 = scalar_lea.vmem [#allocation2], %s1187_s19 }
  0x18   : > { %180 = vst [vmem:[#allocation1 + $0x10] ss:$2 sm:$0xff] %v1385_v0  ;;  %v170_v2 = vld [vmem:[%s168_s28 + $0x8] sm:$0xf]  ;;  %s1053_s27 = sshll.u32 %s163_s16, 4  ;;  %s1055_s28 = sshll.u32 %s1051_s26, 4  ;;  %s1054_s27 = int_to_ptr.vmem [resolvable:$true] %s1053_s27  ;;  %s1056_s28 = int_to_ptr.hbm [resolvable:$true] %s1055_s28 }
  0x19   : > { %178 = vst [vmem:[#allocation1] ss:$2 sm:$0xff] %v1387_v1 }
  0x1f   : > { %v183_v3 = vld.sshfl [vmem:[#allocation1 + $0x10] sm:$0xff pattern:$0x75316420]  ;;  %v184_v4 = vld.sshfl [vmem:[#allocation1 + $0x18] sm:$0xff pattern:$0x75316420] }
  0x20   : > { %189 = vrot.lane.b32.xlu0 %v183_v3, %s1303_s29  ;;  %v181_v5 = vld.sshfl [vmem:[#allocation1] sm:$0xff pattern:$0x75316420]  ;;  %272 = vst [vmem:[#allocation1 + $0x10] ss:$2 sm:$0xff] %v170_v2 }
  0x21   : > { %185 = vrot.lane.b32.xlu1 %v181_v5, %s1303_s29  ;;  %v182_v6 = vld.sshfl [vmem:[#allocation1 + $0x8] sm:$0xff pattern:$0x75316420]  ;;  %v1148_v3 = vld [vmem:[%s1551_s1 + $0x20] sm:$0xff] }
  0x22   : > { %270 = vst [vmem:[#allocation1] ss:$2 sm:$0xff] %v1387_v1 }
  0x27   : > { %v1392_v7 = vld.sshfl [vmem:[#allocation1 + $0x10] sm:$0xff pattern:$0x75316420] }
  0x28   : > { %191 = vrot.lane.b32.xlu0 %v184_v4, %s1303_s29  ;;  %353 = vst [vmem:[#allocation1 + $0x10] ss:$2 sm:$0xff] %v1385_v0 }
  0x29   : > { %187 = vrot.lane.b32.xlu1 %v182_v6, %s1303_s29  ;;  %v1395_v8 = vld.sshfl [vmem:[#allocation1] sm:$0xff pattern:$0x75316420]  ;;  %v1397_v9 = vld.sshfl [vmem:[#allocation1 + $0x8] sm:$0xff pattern:$0x75316420] }
  0x2a   : > { %351 = vst [vmem:[#allocation1] ss:$2 sm:$0xff] %v1387_v1  ;;  %1128 = vmatpush.msk.msra.mxu3 %vm201_vm0, %v1395_v8  ;;  %s1040_s29 = scalar_lea.sflag [#allocation3], %s161_s17 }
  0x2b   : > { %1129 = vmatmul.msk.f32.vlgmr.msra.gmra.mxu3 %vm197_vm1, %v171_v39 }
  0x2f   : > { %v356_v10 = vld.sshfl [vmem:[#allocation1 + $0x10] sm:$0xff pattern:$0x75316420]  ;;  %v357_v11 = vld.sshfl [vmem:[#allocation1 + $0x18] sm:$0xff pattern:$0x75316420] }
  0x30   : > { %362 = vrot.lane.b32.xlu0 %v356_v10, %s1304_s30  ;;  %450 = vst [vmem:[#allocation1 + $0x10] ss:$2 sm:$0xff] %v1385_v0 }
  0x31   : > { %v354_v12 = vld.sshfl [vmem:[#allocation1] sm:$0xff pattern:$0x75316420]  ;;  %v355_v13 = vld.sshfl [vmem:[#allocation1 + $0x8] sm:$0xff pattern:$0x75316420] }
  0x32   : > { %358 = vrot.lane.b32.xlu2 %v354_v12, %s1304_s30  ;;  %448 = vst [vmem:[#allocation1] ss:$2 sm:$0xff] %v1387_v1 }
  0x37   : > { %v453_v14 = vld.sshfl [vmem:[#allocation1 + $0x10] sm:$0xff pattern:$0x75316420]  ;;  %v454_v15 = vld.sshfl [vmem:[#allocation1 + $0x18] sm:$0xff pattern:$0x75316420] }
  0x38   : > { %364 = vrot.lane.b32.xlu0 %v357_v11, %s1304_s30  ;;  %547 = vst [vmem:[#allocation1 + $0x10] ss:$2 sm:$0xff] %v1385_v0  ;;  %v1155_v11 = vld [vmem:[%s1551_s1 + $0x28] sm:$0xff] }
  0x39   : > { %v452_v16 = vld.sshfl [vmem:[#allocation1 + $0x8] sm:$0xff pattern:$0x75316420]  ;;  %v451_v17 = vld.sshfl [vmem:[#allocation1] sm:$0xff pattern:$0x75316420] }
  0x3a   : > { %457 = vrot.lane.b32.xlu1 %v452_v16, %s1305_s4  ;;  %360 = vrot.lane.b32.xlu2 %v355_v13, %s1304_s30  ;;  %545 = vst [vmem:[#allocation1] ss:$2 sm:$0xff] %v1387_v1  ;;  %s1253_s30 = sshra.s32 %s1056_s28, 4  ;;  %s1254_s30 = int_to_ptr.hbm [resolvable:$true] %s1253_s30 }
  0x3b   : > { %p1260_p0 = scmp.lt.s32.totalorder %s1254_s30, %s1553_s3 }
  0x3f   : > { %v550_v18 = vld.sshfl [vmem:[#allocation1 + $0x10] sm:$0xff pattern:$0x75316420]  ;;  %v551_v19 = vld.sshfl [vmem:[#allocation1 + $0x18] sm:$0xff pattern:$0x75316420] }
  0x40   : > { %556 = vrot.lane.b32.xlu0 %v550_v18, %s1306_s5  ;;  %644 = vst [vmem:[#allocation1 + $0x10] ss:$2 sm:$0xff] %v1385_v0  ;;  %v1162_v18 = vld [vmem:[%s1551_s1 + $0x30] sm:$0xff] }
  0x41   : > { %v548_v20 = vld.sshfl [vmem:[#allocation1] sm:$0xff pattern:$0x75316420]  ;;  %v549_v21 = vld.sshfl [vmem:[#allocation1 + $0x8] sm:$0xff pattern:$0x75316420] }
  0x42   : > { %455 = vrot.lane.b32.xlu1 %v451_v17, %s1305_s4  ;;  %459 = vrot.lane.b32.xlu2 %v453_v14, %s1305_s4  ;;  %642 = vst [vmem:[#allocation1] ss:$2 sm:$0xff] %v1387_v1 }
  0x47   : > { %v647_v22 = vld.sshfl [vmem:[#allocation1 + $0x10] sm:$0xff pattern:$0x75316420]  ;;  %v648_v23 = vld.sshfl [vmem:[#allocation1 + $0x18] sm:$0xff pattern:$0x75316420] }
  0x48   : > { %554 = vrot.lane.b32.xlu0 %v549_v21, %s1306_s5  ;;  %741 = vst [vmem:[#allocation1 + $0x10] ss:$2 sm:$0xff] %v1385_v0 }
  0x49   : > { %v645_v24 = vld.sshfl [vmem:[#allocation1] sm:$0xff pattern:$0x75316420]  ;;  %v646_v25 = vld.sshfl [vmem:[#allocation1 + $0x8] sm:$0xff pattern:$0x75316420] }
  0x4a   : > { %558 = vrot.lane.b32.xlu1 %v551_v19, %s1306_s5  ;;  %461 = vrot.lane.b32.xlu2 %v454_v15, %s1305_s4  ;;  %739 = vst [vmem:[#allocation1] ss:$2 sm:$0xff] %v1387_v1  ;;  %s1255_s4 = scalar_lea.hbm %s1254_s30, 24 }
  0x4b   : > { %p1256_p11 = scmp.ne.s32.totalorder %s1254_s30, %s1255_s4 }
  0x4d   : > { %p1257_p12 = pnand %p1256_p11, %p1370_p5 }
  0x4f   : > { %v744_v26 = vld.sshfl [vmem:[#allocation1 + $0x10] sm:$0xff pattern:$0x75316420]  ;;  %v745_v27 = vld.sshfl [vmem:[#allocation1 + $0x18] sm:$0xff pattern:$0x75316420]  ;;  %p1258_p13 = pneg %p1257_p12 }
  0x50   : > { %655 = vrot.lane.b32.xlu0 %v648_v23, %s1307_s6  ;;  %838 = vst [vmem:[#allocation1 + $0x10] ss:$2 sm:$0xff] %v1385_v0  ;;  %v1024_v23 = vld [vmem:[%s1552_s2] sm:$0xff] }
  0x51   : > { %v743_v28 = vld.sshfl [vmem:[#allocation1 + $0x8] sm:$0xff pattern:$0x75316420]  ;;  %v742_v29 = vld.sshfl [vmem:[#allocation1] sm:$0xff pattern:$0x75316420] }
  0x52   : > { %649 = vrot.lane.b32.xlu1 %v645_v24, %s1307_s6  ;;  %552 = vrot.lane.b32.xlu2 %v548_v20, %s1306_s5  ;;  %836 = vst [vmem:[#allocation1] ss:$2 sm:$0xff] %v1387_v1  ;;  %v1169_v20 = vld [vmem:[%s1551_s1 + $0x38] sm:$0xff]  ;;  %v1311_v24 = vmov 0  }
  0x53   : > { %1237 = vset.pattern.permute.xlu2 %v1311_v24  ;;  %1238 = vset.pattern.permute.xlu0 %v1311_v24 }
  0x57   : > { %v841_v30 = vld.sshfl [vmem:[#allocation1 + $0x10] sm:$0xff pattern:$0x75316420]  ;;  %v842_v31 = vld.sshfl [vmem:[#allocation1 + $0x18] sm:$0xff pattern:$0x75316420] }
  0x58   : > { %746 = vrot.lane.b32.xlu0 %v742_v29, %s1308_s7  ;;  %935 = vst [vmem:[#allocation1 + $0x10] ss:$2 sm:$0xff] %v1385_v0 }
  0x59   : > { %v840_v32 = vld.sshfl [vmem:[#allocation1 + $0x8] sm:$0xff pattern:$0x75316420]  ;;  %v839_v33 = vld.sshfl [vmem:[#allocation1] sm:$0xff pattern:$0x75316420] }
  0x5a   : > { %748 = vrot.lane.b32.xlu1 %v743_v28, %s1308_s7  ;;  %651 = vrot.lane.b32.xlu2 %v646_v25, %s1307_s6  ;;  %933 = vst [vmem:[#allocation1] ss:$2 sm:$0xff] %v1387_v1 }
  0x5f   : > { %v938_v35 = vld.sshfl [vmem:[#allocation1 + $0x10] sm:$0xff pattern:$0x75316420]  ;;  %v939_v37 = vld.sshfl [vmem:[#allocation1 + $0x18] sm:$0xff pattern:$0x75316420] }
  0x60   : > { %847 = vrot.lane.b32.xlu0 %v841_v30, %s1309_s8 }
  0x61   : > { %v936_v34 = vld.sshfl [vmem:[#allocation1] sm:$0xff pattern:$0x75316420]  ;;  %v937_v36 = vld.sshfl [vmem:[#allocation1 + $0x8] sm:$0xff pattern:$0x75316420] }
  0x62   : > { %750 = vrot.lane.b32.xlu1 %v744_v26, %s1308_s7  ;;  %653 = vrot.lane.b32.xlu2 %v647_v22, %s1307_s6 }
  0x68   : > { %849 = vrot.lane.b32.xlu0 %v842_v31, %s1309_s8 }
  0x6a   : > { %752 = vrot.lane.b32.xlu1 %v745_v27, %s1308_s7  ;;  %845 = vrot.lane.b32.xlu2 %v840_v32, %s1309_s8  ;;  %s1259_s7 = scalar_lea.hbm %s1553_s3, 48 }
  0x6b   : > { %p1261_p1 = scmp.lt.s32.totalorder %s1259_s7, %s1255_s4 }
  0x6d   : > { %p1262_p2 = por %p1261_p1, %p1260_p0 }
  0x6f   : > { %p1263_p3 = pnand %p1262_p2, %p1258_p13 }
  0x70   : > { %940 = vrot.lane.b32.xlu0 %v936_v34, %s1310_s9 }
  0x72   : > { %944 = vrot.lane.b32.xlu1 %v938_v35, %s1310_s9  ;;  %843 = vrot.lane.b32.xlu2 %v839_v33, %s1309_s8  ;;  %v1176_v35 = vld [vmem:[%s1551_s1 + $0x40] sm:$0xff] }
  0x7a   : > { %942 = vrot.lane.b32.xlu1 %v937_v36, %s1310_s9  ;;  %946 = vrot.lane.b32.xlu2 %v939_v37, %s1310_s9 }
  0x82   : > { %1027 = vperm.xlu2 %1237, %v1024_v23  }
  0x8c   : > { %v359_v38 = vpop.permute.xlu2 %358 }
  0x92   : > { %v190_v40 = vpop.permute.xlu0 %189 }
  0x93   : > { %v186_v41 = vpop.permute.xlu1 %185 }
  0x94   : > { %v361_v42 = vpop.permute.xlu2 %360 }
  0x95   : > { %v367_v46 = vsel %vm366_vm3, %v359_v38, %v361_v42 }
  0x9a   : > { %v192_v43 = vpop.permute.xlu0 %191 }
  0x9b   : > { %v188_v44 = vpop.permute.xlu1 %187  ;;  %v196_v45 = vsel %vm193_vm2, %v190_v40, %v192_v43 }
  0x9c   : > { %v194_v47 = vsel %vm193_vm2, %v186_v41, %v188_v44  ;;  %v195_v48 = vsel %vm193_vm2, %v188_v44, %v190_v40  ;;  %1126 = vmatpush.msk.msra.mxu2 %vm201_vm0, %v196_v45  ;;  %v460_v49 = vpop.permute.xlu2 %459 }
  0x9d   : > { %1122 = vmatpush.msk.msra.mxu0 %vm201_vm0, %v194_v47  ;;  %1124 = vmatpush.msk.msra.mxu1 %vm201_vm0, %v195_v48 }
  0x9e   : > { %1135 = vmatpush.msk.msrb.mxu2 %vm201_vm0, %v367_v46  ;;  %1123 = vmatmul.msk.f32.vlgmr.msra.gmra.mxu0 %vm197_vm1, %v1121_v50 }
  0x9f   : > { %1130 = vmatpush.msk.msrb.mxu0 %vm201_vm0, %v1397_v9  ;;  %1125 = vmatmul.msk.f32.vlgmr.msra.gmra.mxu1 %vm197_vm1, %v1121_v50 }
  0xa0   : > { %1127 = vmatmul.msk.f32.vlgmr.msra.gmra.mxu2 %vm197_vm1, %v1121_v50  ;;  %1132 = vmatpush.msk.msrb.mxu1 %vm201_vm0, %v1392_v7 }
  0xa2   : > { %v363_v51 = vpop.permute.xlu0 %362 }
  0xa3   : > { %v368_v52 = vsel %vm366_vm3, %v361_v42, %v363_v51 }
  0xa4   : > { %1137 = vmatpush.msk.msrb.mxu3 %vm201_vm0, %v368_v52  ;;  %v462_v53 = vpop.permute.xlu2 %461 }
  0xa5   : > { %v466_v55 = vsel %vm463_vm4, %v460_v49, %v462_v53  ;;  %1138 = vmatmul.msk.f32.vlgmr.msrb.gmra.mxu3 %vm197_vm1, %v1134_v54 }
  0xa6   : > { %1146 = vmatpush.msk.msra.mxu3 %vm201_vm0, %v466_v55  ;;  %1131 = vmatmul.msk.f32.vlgmr.msrb.gmra.mxu0 %vm197_vm1, %v171_v39 }
  0xa7   : > { %1133 = vmatmul.msk.f32.vlgmr.msrb.gmra.mxu1 %vm197_vm1, %v171_v39 }
  0xa8   : > { %1136 = vmatmul.msk.f32.vlgmr.msrb.gmra.mxu2 %vm197_vm1, %v1134_v54 }
  0xaa   : > { %v365_v56 = vpop.permute.xlu0 %364 }
  0xab   : > { %v369_v57 = vsel %vm366_vm3, %v363_v51, %v365_v56 }
  0xac   : > { %v458_v58 = vpop.permute.xlu1 %457  ;;  %1139 = vmatpush.msk.msra.mxu0 %vm201_vm0, %v369_v57  ;;  %v553_v59 = vpop.permute.xlu2 %552 }
  0xad   : > { %v465_v61 = vsel %vm463_vm4, %v458_v58, %v460_v49  ;;  %1147 = vmatmul.msk.f32.vlgmr.msra.gmra.mxu3 %vm197_vm1, %v1141_v60 }
  0xae   : > { %1144 = vmatpush.msk.msra.mxu2 %vm201_vm0, %v465_v61  ;;  %1140 = vmatmul.msk.f32.vlgmr.msra.gmra.mxu0 %vm197_vm1, %v1134_v54  ;;  %v302_v44 = vpop.f32.mrf.mxu3 }
  0xb0   : > { %1145 = vmatmul.msk.f32.vlgmr.msra.gmra.mxu2 %vm197_vm1, %v1141_v60 }
  0xb2   : > { %v557_v62 = vpop.permute.xlu0 %556 }
  0xb4   : > { %v456_v63 = vpop.permute.xlu1 %455  ;;  %v652_v0 = vpop.permute.xlu2 %651 }
  0xb5   : > { %v464_v1 = vsel %vm463_vm4, %v456_v63, %v458_v58 }
  0xb6   : > { %1142 = vmatpush.msk.msra.mxu1 %vm201_vm0, %v464_v1 }
  0xb7   : > { %1143 = vmatmul.msk.f32.vlgmr.msra.gmra.mxu1 %vm197_vm1, %v1141_v60 }
  0xba   : > { %v555_v2 = vpop.permute.xlu0 %554 }
  0xbb   : > { %v561_v4 = vsel %vm560_vm5, %v553_v59, %v555_v2  ;;  %v562_v5 = vsel %vm560_vm5, %v555_v2, %v557_v62 }
  0xbc   : > { %v559_v6 = vpop.permute.xlu1 %558  ;;  %1151 = vmatpush.msk.msrb.mxu1 %vm201_vm0, %v562_v5  ;;  %1149 = vmatpush.msk.msrb.mxu0 %vm201_vm0, %v561_v4  ;;  %v654_v7 = vpop.permute.xlu2 %653 }
  0xbd   : > { %v563_v8 = vsel %vm560_vm5, %v557_v62, %v559_v6  ;;  %v659_v9 = vsel %vm657_vm6, %v652_v0, %v654_v7  ;;  %1150 = vmatmul.msk.f32.vlgmr.msrb.gmra.mxu0 %vm197_vm1, %v1148_v3 }
  0xbe   : > { %1153 = vmatpush.msk.msrb.mxu2 %vm201_vm0, %v563_v8  ;;  %1158 = vmatpush.msk.msra.mxu0 %vm201_vm0, %v659_v9 }
  0xbf   : > { %1152 = vmatmul.msk.f32.vlgmr.msrb.gmra.mxu1 %vm197_vm1, %v1148_v3  ;;  %1154 = vmatmul.msk.f32.vlgmr.msrb.gmra.mxu2 %vm197_vm1, %v1148_v3 }
  0xc2   : > { %v656_v10 = vpop.permute.xlu0 %655 }
  0xc3   : > { %v660_v12 = vsel %vm657_vm6, %v654_v7, %v656_v10 }
  0xc4   : > { %v650_v13 = vpop.permute.xlu1 %649  ;;  %v846_v14 = vpop.permute.xlu2 %845  ;;  %1160 = vmatpush.msk.msra.mxu1 %vm201_vm0, %v660_v12 }
  0xc5   : > { %v658_v15 = vsel %vm657_vm6, %v650_v13, %v652_v0  ;;  %1159 = vmatmul.msk.f32.vlgmr.msra.gmra.mxu0 %vm197_vm1, %v1155_v11 }
  0xc6   : > { %1156 = vmatpush.msk.msrb.mxu3 %vm201_vm0, %v658_v15 }
  0xc7   : > { %1157 = vmatmul.msk.f32.vlgmr.msrb.gmra.mxu3 %vm197_vm1, %v1155_v11  ;;  %1161 = vmatmul.msk.f32.vlgmr.msra.gmra.mxu1 %vm197_vm1, %v1155_v11 }
  0xca   : > { %v747_v16 = vpop.permute.xlu0 %746 }
  0xcc   : > { %v749_v17 = vpop.permute.xlu1 %748  ;;  %v844_v19 = vpop.permute.xlu2 %843 }
  0xcd   : > { %v755_v21 = vsel %vm754_vm7, %v747_v16, %v749_v17  ;;  %v852_v22 = vsel %vm851_vm8, %v844_v19, %v846_v14 }
  0xce   : > { %1163 = vmatpush.msk.msra.mxu2 %vm201_vm0, %v755_v21  ;;  %1170 = vmatpush.msk.msrb.mxu1 %vm201_vm0, %v852_v22 }
  0xcf   : > { %1164 = vmatmul.msk.f32.vlgmr.msra.gmra.mxu2 %vm197_vm1, %v1162_v18  ;;  %1171 = vmatmul.msk.f32.vlgmr.msrb.gmra.mxu1 %vm197_vm1, %v1169_v20 }
  0xd2   : > { %v848_v25 = vpop.permute.xlu0 %847 }
  0xd3   : > { %v853_v26 = vsel %vm851_vm8, %v846_v14, %v848_v25 }
  0xd4   : > { %v751_v27 = vpop.permute.xlu1 %750  ;;  %1172 = vmatpush.msk.msrb.mxu2 %vm201_vm0, %v853_v26  ;;  %v947_v33 = vpop.permute.xlu2 %946 }
  0xd5   : > { %v756_v28 = vsel %vm754_vm7, %v749_v17, %v751_v27 }
  0xd6   : > { %1165 = vmatpush.msk.msra.mxu3 %vm201_vm0, %v756_v28 }
  0xd7   : > { %1166 = vmatmul.msk.f32.vlgmr.msra.gmra.mxu3 %vm197_vm1, %v1162_v18  ;;  %1173 = vmatmul.msk.f32.vlgmr.msrb.gmra.mxu2 %vm197_vm1, %v1169_v20 }
  0xda   : > { %v850_v29 = vpop.permute.xlu0 %849 }
  0xdb   : > { %v854_v30 = vsel %vm851_vm8, %v848_v25, %v850_v29 }
  0xdc   : > { %v753_v31 = vpop.permute.xlu1 %752  ;;  %1174 = vmatpush.msk.msrb.mxu3 %vm201_vm0, %v854_v30  ;;  %v1028_v21 = vpop.permute.xlu2 %1027 }
  0xdd   : > { %v757_v32 = vsel %vm754_vm7, %v751_v27, %v753_v31 }
  0xde   : > { %1167 = vmatpush.msk.msrb.mxu0 %vm201_vm0, %v757_v32 }
  0xdf   : > { %1168 = vmatmul.msk.f32.vlgmr.msrb.gmra.mxu0 %vm197_vm1, %v1162_v18  ;;  %1175 = vmatmul.msk.f32.vlgmr.msrb.gmra.mxu3 %vm197_vm1, %v1169_v20 }
  0xe2   : > { %v941_v37 = vpop.permute.xlu0 %940 }
  0xe4   : > { %v945_v34 = vpop.permute.xlu1 %944 }
  0xe5   : > { %v951_v36 = vsel %vm948_vm9, %v945_v34, %v947_v33 }
  0xe6   : > { %1181 = vmatpush.msk.msra.mxu2 %vm201_vm0, %v951_v36 }
  0xe7   : > { %1182 = vmatmul.msk.f32.vlgmr.msra.gmra.mxu2 %vm197_vm1, %v1176_v35 }
  0xec   : > { %v943_v38 = vpop.permute.xlu1 %942 }
  0xed   : > { %v950_v39 = vsel %vm948_vm9, %v943_v38, %v945_v34  ;;  %v949_v40 = vsel %vm948_vm9, %v941_v37, %v943_v38 }
  0xee   : > { %1177 = vmatpush.msk.msra.mxu0 %vm201_vm0, %v949_v40  ;;  %1179 = vmatpush.msk.msra.mxu1 %vm201_vm0, %v950_v39 }
  0xef   : > { %1178 = vmatmul.msk.f32.vlgmr.msra.gmra.mxu0 %vm197_vm1, %v1176_v35  ;;  %1180 = vmatmul.msk.f32.vlgmr.msra.gmra.mxu1 %vm197_vm1, %v1176_v35 }
 0x11b   : > { %v225_v41 = vpop.f32.mrf.mxu0 }
 0x11c   : > { %v245_v42 = vpop.f32.mrf.mxu1  ;;  %v303_v59 = vadd.f32 %v302_v44, %v225_v41 }
 0x123   : > { %v265_v43 = vpop.f32.mrf.mxu2  ;;  %v322_v45 = vpop.f32.mrf.mxu0 }
 0x124   : > { %v342_v46 = vpop.f32.mrf.mxu1  ;;  %v323_v57 = vadd.f32 %v322_v45, %v245_v42 }
 0x125   : > { %v343_v58 = vadd.f32 %v342_v46, %v265_v43 }
 0x128   : > { %v416_v48 = vpop.f32.mrf.mxu3 }
 0x129   : > { %v440_v60 = vadd.f32 %v416_v48, %v323_v57 }
 0x12b   : > { %v396_v47 = vpop.f32.mrf.mxu2  ;;  %v436_v49 = vpop.f32.mrf.mxu0 }
 0x12c   : > { %v441_v61 = vadd.f32 %v436_v49, %v343_v58  ;;  %v439_v63 = vadd.f32 %v396_v47, %v303_v59 }
 0x130   : > { %v533_v52 = vpop.f32.mrf.mxu3 }
 0x131   : > { %v538_v4 = vadd.f32 %v533_v52, %v441_v61 }
 0x133   : > { %v513_v51 = vpop.f32.mrf.mxu2 }
 0x134   : > { %v493_v50 = vpop.f32.mrf.mxu1  ;;  %v537_v3 = vadd.f32 %v513_v51, %v440_v60 }
 0x135   : > { %v536_v5 = vadd.f32 %v493_v50, %v439_v63 }
 0x13a   : > { %v590_v53 = vpop.f32.mrf.mxu0 }
 0x13b   : > { %v633_v9 = vadd.f32 %v590_v53, %v536_v5 }
 0x13c   : > { %v610_v54 = vpop.f32.mrf.mxu1 }
 0x13d   : > { %v634_v6 = vadd.f32 %v610_v54, %v537_v3 }
 0x142   : > { %v630_v55 = vpop.f32.mrf.mxu2  ;;  %v707_v0 = vpop.f32.mrf.mxu0 }
 0x143   : > { %v635_v7 = vadd.f32 %v630_v55, %v538_v4  ;;  %v731_v13 = vadd.f32 %v707_v0, %v634_v6 }
 0x144   : > { %v727_v1 = vpop.f32.mrf.mxu1 }
 0x145   : > { %v732_v14 = vadd.f32 %v727_v1, %v635_v7 }
 0x14a   : > { %v687_v56 = vpop.f32.mrf.mxu3 }
 0x14b   : > { %v730_v12 = vadd.f32 %v687_v56, %v633_v9 }
 0x14c   : > { %v881_v10 = vpop.f32.mrf.mxu1 }
 0x152   : > { %v784_v62 = vpop.f32.mrf.mxu2 }
 0x153   : > { %v827_v16 = vadd.f32 %v784_v62, %v730_v12 }
 0x155   : > { %v924_v22 = vadd.f32 %v881_v10, %v827_v16 }
 0x15a   : > { %v804_v2 = vpop.f32.mrf.mxu3  ;;  %v901_v8 = vpop.f32.mrf.mxu2 }
 0x15b   : > { %v828_v17 = vadd.f32 %v804_v2, %v731_v13 }
 0x15c   : > { %v824_v11 = vpop.f32.mrf.mxu0 }
 0x15d   : > { %v829_v18 = vadd.f32 %v824_v11, %v732_v14  ;;  %v925_v23 = vadd.f32 %v901_v8, %v828_v17 }
 0x162   : > { %v921_v15 = vpop.f32.mrf.mxu3 }
 0x163   : > { %v926_v19 = vadd.f32 %v921_v15, %v829_v18 }
 0x16a   : > { %v1018_v20 = vpop.f32.mrf.mxu2 }
 0x16b   : > { %v1023_v24 = vadd.f32 %v1018_v20, %v926_v19 }
 0x16c   : > { %v978_v25 = vpop.f32.mrf.mxu0  ;;  %v998_v26 = vpop.f32.mrf.mxu1 }
 0x16d   : > { %v1032_v27 = vadd.f32 %v1028_v21, %v1023_v24  ;;  %v1021_v28 = vadd.f32 %v978_v25, %v924_v22  ;;  %v1022_v29 = vadd.f32 %v998_v26, %v925_v23 }
 0x16f   : > { %v1035_v30 = vmax.f32 %v1032_v27, 0.0  ;;  %v1030_v31 = vadd.f32 %v1028_v21, %v1021_v28  ;;  %v1031_v32 = vadd.f32 %v1028_v21, %v1022_v29 }
 0x171   : > { %1038 = vst [vmem:[%s163_s16 + $0x10] sm:$0xff] %v1035_v30  ;;  %v1033_v33 = vmax.f32 %v1030_v31, 0.0  ;;  %v1034_v34 = vmax.f32 %v1031_v32, 0.0 }
 0x173   : > { %1036 = vst [vmem:[%s163_s16] sm:$0xff] %v1033_v33 }
 0x174   : > { %1037 = vst [vmem:[%s163_s16 + $0x8] sm:$0xff] %v1034_v34 }
 0x175   : > { %1266 = shalt.err (!%p1263_p3)
}
 0x176   : > { %1189 = dma.vmem_to_hbm [thread:$0]  (%p1370_p5), %s1054_s27, 384, %s1056_s28, %s1040_s29  }
 0x177 PF: > { %p1195_p4 = scmp.ge.s32.totalorder %s1301_s15, 2  ;;  %s1067_s10 = sand.u32 1, %s1289_s12  }
 0x178   : > { %s1068_s11 = scalar_lea.sflag [#allocation3], %s1067_s10 }
 0x179   : > { %p1192_p7 = pnand %p1195_p4, %p1374_p6 }
 0x17b   : > { %p1193_p8 = pneg %p1192_p7 }
 0x17d   : > { %1284 = dma.done.wait (%p1193_p8), %s1068_s11, 384  }
 0x17e   : > { %1286 = vsyncadd (%p1193_p8), %s1068_s11, 4294966912  ;;  %p13_p9 = scmp.ge.s32.totalorder %s1357_s18, 4   ;;  %s1556_s12 = smov %s1293_s13 }
 0x17f   : > { %s1557_s13 = smov %s1297_s14  ;;  %s1558_s14 = smov %s1368_s21 }
 0x180   : > { %s1559_s15 = smov %s1357_s18  ;;  %15 = sbr.rel (!%p13_p9) target bundleno = 3 (0x3), region = 84 }
 0x185   :  { %1074 = vsyncpa [#allocation3], 1 }
 0x186   :  { %1076 = vsyncpa [#allocation3 + $0x1], 1 }

</bundles_post_ra>
